<compile_context>
chip_gen: v7x
topology: tpu7x:2x2x1
jax: 0.10.0
libtpu: 0.0.40
codegen_flags: <defaults>
</compile_context>

<pallas_src>
import functools

import jax
import jax.numpy as jnp
from jax import lax
from jax.experimental import pallas as pl
from jax.experimental.pallas import tpu as pltpu


def _sigmoid(x):
    # Exact sigmoid via one EUP tanh (no VPU divide, no approx reciprocal).
    return 0.5 * jnp.tanh(0.5 * x) + 0.5


def _round_up(x, m):
    return (x + m - 1) // m * m


def _itemsize(dt):
    return jnp.dtype(dt).itemsize


def _invariant_spec(block_shape, index_map):
    """BlockSpec for a grid-invariant operand: request a single VMEM buffer."""
    try:
        return pl.BlockSpec(block_shape, index_map, pipeline_mode=pl.Buffered(1))
    except (TypeError, AttributeError):  # older jax without pipeline_mode
        return pl.BlockSpec(block_shape, index_map)


def _vmem_budget_bytes():
    """Generation-aware scoped-VMEM budget with ~15% headroom for compiler scratch."""
    try:
        cap = int(pltpu.get_tpu_info().vmem_capacity_bytes)
    except Exception:
        cap = 64 * 1024 * 1024  # conservative default (v7x per-TensorCore VMEM)
    return max(32 * 1024 * 1024, int(cap * 0.85))


# ----------------------------------------------------------------------------
# Fused kernel: W fully resident in VMEM (single-buffered), batch-parallel grid.
# ----------------------------------------------------------------------------
def _rbm_fused_kernel(v_ref, w_ref, a_ref, b_ref, o_ref):
    # v_ref (tb, V), w_ref (V, H) resident, a_ref (1, H), b_ref (1, V), o_ref (tb, V)
    v = v_ref[...]
    w = w_ref[...]
    act_h = jnp.dot(v, w, preferred_element_type=jnp.float32) + a_ref[...]
    h = _sigmoid(act_h)                                    # (tb, H), f32
    # NT matmul: contract H of both operands -> no in-kernel transpose of W.
    act_v = lax.dot_general(
        h.astype(w.dtype), w,
        dimension_numbers=(((1,), (1,)), ((), ())),
        preferred_element_type=jnp.float32,
    ) + b_ref[...]
    o_ref[...] = _sigmoid(act_v).astype(o_ref.dtype)


# ----------------------------------------------------------------------------
# Streaming (V-tiled) path: W is never resident; (tile_v, H) blocks are streamed.
# Pass 1: h = sigmoid(v @ W + a) with an f32 accumulator over V tiles.
# Pass 2: v_rec = sigmoid(h @ W.T + b), one output V tile per grid step.
# ----------------------------------------------------------------------------
def _rbm_hidden_kernel(v_ref, w_ref, a_ref, h_ref, acc_ref, *, num_visible, tile_v):
    k = pl.program_id(1)

    @pl.when(k == 0)
    def _():
        acc_ref[...] = jnp.zeros_like(acc_ref)

    vb = v_ref[...]                                        # (tb, tile_v)
    wb = w_ref[...]                                        # (tile_v, H)
    if num_visible % tile_v != 0:
        # Zero out-of-range V columns/rows of the boundary block so padded-DMA
        # garbage cannot contaminate the reduction over V.
        off = k * tile_v
        col = lax.broadcasted_iota(jnp.int32, vb.shape, 1) + off
        vb = jnp.where(col < num_visible, vb, jnp.zeros_like(vb))
        row = lax.broadcasted_iota(jnp.int32, wb.shape, 0) + off
        wb = jnp.where(row < num_visible, wb, jnp.zeros_like(wb))

    acc_ref[...] += jnp.dot(vb, wb, preferred_element_type=jnp.float32)

    @pl.when(k == pl.num_programs(1) - 1)
    def _():
        h_ref[...] = _sigmoid(acc_ref[...] + a_ref[...]).astype(h_ref.dtype)


def _rbm_recon_kernel(h_ref, w_ref, b_ref, o_ref):
    # Output column j depends only on W row j; boundary garbage stays in discarded
    # (masked-writeback) columns, so no explicit masking is needed here.
    act_v = lax.dot_general(
        h_ref[...], w_ref[...],
        dimension_numbers=(((1,), (1,)), ((), ())),
        preferred_element_type=jnp.float32,
    ) + b_ref[...]
    o_ref[...] = _sigmoid(act_v).astype(o_ref.dtype)


# ----------------------------------------------------------------------------
# Wrapper
# ----------------------------------------------------------------------------
def rbm_forward(v, W, a, b, *, tile_b=256, tile_v=512,
                compute_dtype=jnp.bfloat16, out_dtype=jnp.float32,
                force_stream=None):
    """forward(v) = sigmoid(sigmoid(v @ W + a) @ W.T + b)."""
    B, V = v.shape
    Vw, H = W.shape
    assert V == Vw
    cd = _itemsize(compute_dtype)
    od = _itemsize(out_dtype)

    a2 = a.reshape(1, H).astype(jnp.float32)
    b2 = b.reshape(1, V).astype(jnp.float32)
    w_in = W.astype(compute_dtype)
    v_in = v.astype(compute_dtype)

    # Batch tile: multiple of 16 (bf16 sublane packing), no larger than round-up(B).
    tb = max(16, min(_round_up(tile_b, 16), _round_up(B, 16)))
    n_b = pl.cdiv(B, tb)
    budget = _vmem_budget_bytes()

    fused_need = (V * H * cd                      # resident W (single-buffered)
                  + 2 * tb * V * cd               # v tiles (double-buffered)
                  + 2 * tb * V * od               # output tiles (double-buffered)
                  + 2 * tb * max(V, H) * 4        # f32 activation temporaries
                  + 8 * (V + H) * 4)              # biases (sublane-padded)
    use_stream = (fused_need > budget) if force_stream is None else bool(force_stream)

    if not use_stream:
        cost = pl.CostEstimate(
            flops=4 * B * V * H,
            transcendentals=B * (V + H),
            bytes_accessed=B * V * cd + V * H * cd + B * V * od + (V + H) * 4)
        return pl.pallas_call(
            _rbm_fused_kernel,
            out_shape=jax.ShapeDtypeStruct((B, V), out_dtype),
            grid_spec=pltpu.PrefetchScalarGridSpec(
                num_scalar_prefetch=0,
                grid=(n_b,),
                in_specs=[
                    pl.BlockSpec((tb, V), lambda i: (i, 0)),      # v tile
                    _invariant_spec((V, H), lambda i: (0, 0)),    # W (resident, 1 buf)
                    _invariant_spec((1, H), lambda i: (0, 0)),    # hidden bias a
                    _invariant_spec((1, V), lambda i: (0, 0)),    # visible bias b
                ],
                out_specs=pl.BlockSpec((tb, V), lambda i: (i, 0)),
            ),
            compiler_params=pltpu.CompilerParams(
                dimension_semantics=("parallel",),
                vmem_limit_bytes=min(budget, max(int(1.25 * fused_need),
                                                 32 * 1024 * 1024)),
            ),
            cost_estimate=cost,
        )(v_in, w_in, a2, b2)

    # ---------------- streaming path ----------------
    tv = min(tile_v, V)
    if tv < V:
        tv = max(128, (tv // 128) * 128)          # lane constraint along V
    n_k = pl.cdiv(V, tv)

    need_a = (2 * tb * tv * cd + 2 * tv * H * cd + 2 * tb * H * cd
              + tb * H * 4 + 2 * tb * max(tv, H) * 4 + 8 * H * 4)
    h = pl.pallas_call(
        functools.partial(_rbm_hidden_kernel, num_visible=V, tile_v=tv),
        out_shape=jax.ShapeDtypeStruct((B, H), compute_dtype),
        grid_spec=pltpu.PrefetchScalarGridSpec(
            num_scalar_prefetch=0,
            grid=(n_b, n_k),
            in_specs=[
                pl.BlockSpec((tb, tv), lambda i, k: (i, k)),       # v block
                pl.BlockSpec((tv, H), lambda i, k: (k, 0)),        # W block (streamed)
                _invariant_spec((1, H), lambda i, k: (0, 0)),      # hidden bias a
            ],
            out_specs=pl.BlockSpec((tb, H), lambda i, k: (i, 0)),
            scratch_shapes=[pltpu.VMEM((tb, H), jnp.float32)],
        ),
        compiler_params=pltpu.CompilerParams(
            dimension_semantics=("parallel", "arbitrary"),
            vmem_limit_bytes=min(budget, max(int(1.25 * need_a), 32 * 1024 * 1024)),
        ),
        cost_estimate=pl.CostEstimate(
            flops=2 * B * V * H, transcendentals=B * H,
            bytes_accessed=B * V * cd + n_b * V * H * cd + B * H * cd),
    )(v_in, w_in, a2)

    need_b = (2 * tb * H * cd + 2 * tv * H * cd + 2 * tb * tv * od
              + 2 * tb * tv * 4 + 8 * tv * 4)
    return pl.pallas_call(
        _rbm_recon_kernel,
        out_shape=jax.ShapeDtypeStruct((B, V), out_dtype),
        grid_spec=pltpu.PrefetchScalarGridSpec(
            num_scalar_prefetch=0,
            grid=(n_b, n_k),
            in_specs=[
                pl.BlockSpec((tb, H), lambda i, j: (i, 0)),        # h tile
                pl.BlockSpec((tv, H), lambda i, j: (j, 0)),        # W block (streamed)
                pl.BlockSpec((1, tv), lambda i, j: (0, j)),        # visible bias block
            ],
            out_specs=pl.BlockSpec((tb, tv), lambda i, j: (i, j)),
        ),
        compiler_params=pltpu.CompilerParams(
            dimension_semantics=("parallel", "parallel"),
            vmem_limit_bytes=min(budget, max(int(1.25 * need_b), 32 * 1024 * 1024)),
        ),
        cost_estimate=pl.CostEstimate(
            flops=2 * B * V * H, transcendentals=B * V,
            bytes_accessed=B * H * cd + n_b * V * H * cd + B * V * od),
    )(h, w_in, b2)


def rbm_forward_ref(v, W, a, b):
    h = jax.nn.sigmoid(v @ W + a)
    return jax.nn.sigmoid(h @ W.T + b)


if __name__ == "__main__":
    key = jax.random.PRNGKey(0)
    k_w, k_a, k_b, k_v = jax.random.split(key, 4)

    # Small demo shapes, deliberately NOT multiples of the tile sizes so the
    # cdiv grid + boundary-masking paths are exercised.
    batch = 90
    num_visible = 200
    num_hidden = 96

    W = jax.random.normal(k_w, (num_visible, num_hidden), dtype=jnp.float32) * 0.01
    a = jax.random.normal(k_a, (num_hidden,), dtype=jnp.float32) * 0.1
    b = jax.random.normal(k_b, (num_visible,), dtype=jnp.float32) * 0.1
    v = jax.random.uniform(k_v, (batch, num_visible), dtype=jnp.float32)

    ref = rbm_forward_ref(v, W, a, b)

    # 1) Fused resident-W path, f32 MXU operands (tight tolerance, exact sigmoid).
    out_fused_f32 = jax.block_until_ready(
        rbm_forward(v, W, a, b, compute_dtype=jnp.float32, force_stream=False))
    assert out_fused_f32.shape == (batch, num_visible)
    assert jnp.allclose(out_fused_f32, ref, atol=2e-3, rtol=2e-3)

    # 2) Streaming V-tiled path (the v7x / large-V structure), f32 operands,
    #    tile_v forced below V to exercise the reduction grid + boundary masking.
    out_stream_f32 = jax.block_until_ready(
        rbm_forward(v, W, a, b, compute_dtype=jnp.float32, tile_v=128,
                    force_stream=True))
    assert jnp.allclose(out_stream_f32, ref, atol=2e-3, rtol=2e-3)

    # 3) Default configuration: bf16 MXU operands, f32 accumulation, auto path.
    out_default = jax.block_until_ready(rbm_forward(v, W, a, b))
    assert jnp.allclose(out_default, ref, atol=2e-2, rtol=2e-2)

    # 4) Streaming path with bf16 operands (production-style config at toy size).
    out_stream_bf16 = jax.block_until_ready(
        rbm_forward(v, W, a, b, tile_v=128, force_stream=True))
    assert jnp.allclose(out_stream_bf16, ref, atol=2e-2, rtol=2e-2)

    print("KERNEL_OK")
</pallas_src>

<mosaic_0001>
module attributes {stable_mosaic.version = 11 : i64} {
  func.func @_rbm_fused_kernel(%arg0: i32, %arg1: memref<96x200xf32, #tpu.memory_space<vmem>>, %arg2: memref<200x96xf32, #tpu.memory_space<vmem>>, %arg3: memref<1x96xf32, #tpu.memory_space<vmem>>, %arg4: memref<1x200xf32, #tpu.memory_space<vmem>>, %arg5: memref<96x200xf32, #tpu.memory_space<vmem>>) attributes {dimension_semantics = [#tpu.dimension_semantics<parallel>], iteration_bounds = array<i64: 1>, scalar_prefetch = 0 : i64, scratch_operands = 0 : i64, tpu.core_type = #tpu.core_type<tc>, window_params = [{transform_indices = @transform_0, window_bounds = array<i64: 96, 200>}, {pipeline_mode = #tpu.pipeline_mode<synchronous>, transform_indices = @transform_1, window_bounds = array<i64: 200, 96>}, {pipeline_mode = #tpu.pipeline_mode<synchronous>, transform_indices = @transform_2, window_bounds = array<i64: 1, 96>}, {pipeline_mode = #tpu.pipeline_mode<synchronous>, transform_indices = @transform_3, window_bounds = array<i64: 1, 200>}, {transform_indices = @transform_4, window_bounds = array<i64: 96, 200>}]} {
    %c0 = arith.constant 0 : index
    %c0_0 = arith.constant 0 : index
    %0 = vector.load %arg1[%c0, %c0_0] : memref<96x200xf32, #tpu.memory_space<vmem>>, vector<96x200xf32>
    %c0_1 = arith.constant 0 : index
    %c0_2 = arith.constant 0 : index
    %1 = vector.load %arg2[%c0_1, %c0_2] : memref<200x96xf32, #tpu.memory_space<vmem>>, vector<200x96xf32>
    %cst = arith.constant dense<0.000000e+00> : vector<96x96xf32>
    %2 = tpu.matmul %0, %1, %cst {dimension_numbers = #tpu.dot_dimension_numbers<[1], [0], [0], [1], [0, 0, 1, 1], [], []>} : vector<96x200xf32>, vector<200x96xf32>, vector<96x96xf32> -> vector<96x96xf32>
    %c0_3 = arith.constant 0 : index
    %c0_4 = arith.constant 0 : index
    %3 = vector.load %arg3[%c0_3, %c0_4] : memref<1x96xf32, #tpu.memory_space<vmem>>, vector<1x96xf32>
    %4 = vector.broadcast %3 : vector<1x96xf32> to vector<96x96xf32>
    %5 = arith.addf %2, %4 : vector<96x96xf32>
    %cst_5 = arith.constant 5.000000e-01 : f32
    %6 = vector.broadcast %cst_5 : f32 to vector<96x96xf32>
    %7 = arith.mulf %6, %5 : vector<96x96xf32>
    %8 = math.tanh %7 : vector<96x96xf32>
    %cst_6 = arith.constant 5.000000e-01 : f32
    %9 = vector.broadcast %cst_6 : f32 to vector<96x96xf32>
    %10 = arith.mulf %9, %8 : vector<96x96xf32>
    %cst_7 = arith.constant 5.000000e-01 : f32
    %11 = vector.broadcast %cst_7 : f32 to vector<96x96xf32>
    %12 = arith.addf %10, %11 : vector<96x96xf32>
    %cst_8 = arith.constant dense<0.000000e+00> : vector<96x200xf32>
    %13 = tpu.matmul %12, %1, %cst_8 {dimension_numbers = #tpu.dot_dimension_numbers<[1], [1], [0], [0], [0, 0, 1, 0], [], []>} : vector<96x96xf32>, vector<200x96xf32>, vector<96x200xf32> -> vector<96x200xf32>
    %c0_9 = arith.constant 0 : index
    %c0_10 = arith.constant 0 : index
    %14 = vector.load %arg4[%c0_9, %c0_10] : memref<1x200xf32, #tpu.memory_space<vmem>>, vector<1x200xf32>
    %15 = vector.broadcast %14 : vector<1x200xf32> to vector<96x200xf32>
    %16 = arith.addf %13, %15 : vector<96x200xf32>
    %cst_11 = arith.constant 5.000000e-01 : f32
    %17 = vector.broadcast %cst_11 : f32 to vector<96x200xf32>
    %18 = arith.mulf %17, %16 : vector<96x200xf32>
    %19 = math.tanh %18 : vector<96x200xf32>
    %cst_12 = arith.constant 5.000000e-01 : f32
    %20 = vector.broadcast %cst_12 : f32 to vector<96x200xf32>
    %21 = arith.mulf %20, %19 : vector<96x200xf32>
    %cst_13 = arith.constant 5.000000e-01 : f32
    %22 = vector.broadcast %cst_13 : f32 to vector<96x200xf32>
    %23 = arith.addf %21, %22 : vector<96x200xf32>
    %c0_14 = arith.constant 0 : index
    %c0_15 = arith.constant 0 : index
    %24 = vector.load %arg5[%c0_14, %c0_15] : memref<96x200xf32, #tpu.memory_space<vmem>>, vector<96x200xf32>
    tpu.vector_store %arg5[%c0_14, %c0_15], %23 {strides = array<i32>} : memref<96x200xf32, #tpu.memory_space<vmem>>, vector<96x200xf32>,
    return
  }
  func.func @transform_0(%arg0: i32) -> (i32, i32) {
    %c0_i32 = arith.constant 0 : i32
    %c0_i32_0 = arith.constant 0 : i32
    return %arg0, %c0_i32 : i32, i32
  }
  func.func @transform_1(%arg0: i32) -> (i32, i32) {
    %c0_i32 = arith.constant 0 : i32
    %c0_i32_0 = arith.constant 0 : i32
    %c0_i32_1 = arith.constant 0 : i32
    return %c0_i32, %c0_i32_0 : i32, i32
  }
  func.func @transform_2(%arg0: i32) -> (i32, i32) {
    %c0_i32 = arith.constant 0 : i32
    %c0_i32_0 = arith.constant 0 : i32
    %c0_i32_1 = arith.constant 0 : i32
    return %c0_i32, %c0_i32_0 : i32, i32
  }
  func.func @transform_3(%arg0: i32) -> (i32, i32) {
    %c0_i32 = arith.constant 0 : i32
    %c0_i32_0 = arith.constant 0 : i32
    %c0_i32_1 = arith.constant 0 : i32
    return %c0_i32, %c0_i32_0 : i32, i32
  }
  func.func @transform_4(%arg0: i32) -> (i32, i32) {
    %c0_i32 = arith.constant 0 : i32
    %c0_i32_0 = arith.constant 0 : i32
    return %arg0, %c0_i32 : i32, i32
  }
}

</mosaic_0001>

<bundles_post_ra>
// kernel: tpu_custom_call.1
= control target key start
LH: loop header
LB: loop body
LE: loop exit
PB: predicated region body
PF: predicated region fallthrough
CT: control target
= control target key end

     0   :  { %v916_v3 = vmov 0.0|0.0   ;;  %v917_v6 = vmov 0.0   ;;  %vm74_vm0 = vcmask 588800   ;;  %vm296_vm1 = vcmask 785408   ;;  %s1278_s0 = inlined_call_operand.vmem [shape: f32[90,200], index: 0, kind: input, shape index: {}]   ;;  %s1279_s1 = inlined_call_operand.vmem [shape: f32[200,96], index: 1, kind: input, shape index: {}]   ;;  %s1280_s2 = inlined_call_operand.vmem [shape: f32[1,96], index: 2, kind: input, shape index: {}]   ;;  %s1281_s3 = inlined_call_operand.vmem [shape: f32[1,200], index: 3, kind: input, shape index: {}]   ;;  %s1282_s4 = inlined_call_operand.hbm [shape: f32[90,200], index: 4, kind: output, shape index: {}]  }
   0x1   :  { %v42_v0 = vld [vmem:[%s1279_s1] sm:$0xff]  ;;  %v43_v1 = vld [vmem:[%s1279_s1 + $0x8] sm:$0xff]  ;;  %v44_v2 = vld [vmem:[%s1279_s1 + $0x10] sm:$0xff]  ;;  %731 = vmatprep.subr.bf16.mxu0 %v916_v3  ;;  %767 = vmatprep.subr.bf16.mxu1 %v916_v3 }
   0x2   :  { %v732_v4 = vpack.c.bf16 %v43_v1, %v42_v0  ;;  %v45_v5 = vld [vmem:[%s1279_s1 + $0x18] sm:$0xff]  ;;  %472 = vmatprep.mubr.f32.mxu1 %v917_v6  ;;  %v46_v8 = vld [vmem:[%s1279_s1 + $0x20] sm:$0xff]  ;;  %v47_v9 = vld [vmem:[%s1279_s1 + $0x28] sm:$0xff] }
   0x3   :  { %v735_v7 = vpack.c.bf16 %v45_v5, %v44_v2  ;;  %v738_v10 = vpack.c.bf16 %v47_v9, %v46_v8  ;;  %v48_v11 = vld [vmem:[%s1279_s1 + $0x30] sm:$0xff]  ;;  %v49_v12 = vld [vmem:[%s1279_s1 + $0x38] sm:$0xff]  ;;  %v19_v13 = vld [vmem:[%s1278_s0 + $0x8] sm:$0xff] }
   0x4   :  { %733 = vmatpush1.bf16.msra.mxu0 %v732_v4  ;;  %682 = vmatprep.mubr.msk.f32.mxu0 %vm74_vm0, %v19_v13  ;;  %v741_v14 = vpack.c.bf16 %v49_v12, %v48_v11  ;;  %v50_v15 = vld [vmem:[%s1279_s1 + $0x40] sm:$0xff]  ;;  %v51_v16 = vld [vmem:[%s1279_s1 + $0x48] sm:$0xff]  ;;  %v52_v18 = vld [vmem:[%s1279_s1 + $0x50] sm:$0xff] }
   0x5   :  { %734 = vmatprep.subr.bf16.mxu0 %v916_v3  ;;  %v744_v17 = vpack.c.bf16 %v51_v16, %v50_v15  ;;  %v53_v19 = vld [vmem:[%s1279_s1 + $0x58] sm:$0xff]  ;;  %vm995_vm2 = vmpackc.low %vm296_vm1, %vm296_vm1 }
   0x6   :  { %770 = vmatpush1.bf16.xpose.msk.msra.mxu1 %vm995_vm2, %v732_v4 }
   0x8   :  { %736 = vmatpush1.bf16.msra.mxu0 %v735_v7 }
   0x9   :  { %737 = vmatprep.subr.bf16.mxu0 %v916_v3 }
   0xc   :  { %739 = vmatpush1.bf16.msra.mxu0 %v738_v10 }
   0xd   :  { %740 = vmatprep.subr.bf16.mxu0 %v916_v3 }
  0x10   :  { %742 = vmatpush1.bf16.msra.mxu0 %v741_v14 }
  0x11   :  { %743 = vmatprep.subr.bf16.mxu0 %v916_v3 }
  0x12   :  { %9 = vsyncpa [#allocation3], 0  ;;  %771 = vmatprep.subr.bf16.mxu1 %v916_v3  ;;  %v747_v21 = vpack.c.bf16 %v53_v19, %v52_v18  ;;  %v54_v22 = vld [vmem:[%s1279_s1 + $0x60] sm:$0xff]  ;;  %v55_v23 = vld [vmem:[%s1279_s1 + $0x68] sm:$0xff] }
  0x13   :  { %v750_v24 = vpack.c.bf16 %v55_v23, %v54_v22  ;;  %v56_v25 = vld [vmem:[%s1279_s1 + $0x70] sm:$0xff]  ;;  %v57_v26 = vld [vmem:[%s1279_s1 + $0x78] sm:$0xff]  ;;  %774 = vmatpush1.bf16.xpose.msk.msra.mxu1 %vm995_vm2, %v735_v7  ;;  %v58_v28 = vld [vmem:[%s1279_s1 + $0x80] sm:$0xff] }
  0x14   :  { %745 = vmatpush1.bf16.msra.mxu0 %v744_v17  ;;  %775 = vmatprep.subr.bf16.mxu1 %v916_v3  ;;  %v753_v27 = vpack.c.bf16 %v57_v26, %v56_v25  ;;  %v59_v29 = vld [vmem:[%s1279_s1 + $0x88] sm:$0xff]  ;;  %v60_v31 = vld [vmem:[%s1279_s1 + $0x90] sm:$0xff]  ;;  %v61_v32 = vld [vmem:[%s1279_s1 + $0x98] sm:$0xff] }
  0x15   :  { %746 = vmatprep.subr.bf16.mxu0 %v916_v3  ;;  %v1026_v30 = vpack.c.bf16 %v59_v29, %v58_v28  ;;  %v1039_v33 = vpack.c.bf16 %v61_v32, %v60_v31  ;;  %v62_v34 = vld [vmem:[%s1279_s1 + $0xa0] sm:$0xff]  ;;  %v63_v35 = vld [vmem:[%s1279_s1 + $0xa8] sm:$0xff]  ;;  %v64_v37 = vld [vmem:[%s1279_s1 + $0xb0] sm:$0xff] }
  0x16   :  { %v1049_v36 = vpack.c.bf16 %v63_v35, %v62_v34  ;;  %v65_v38 = vld [vmem:[%s1279_s1 + $0xb8] sm:$0xff]  ;;  %v1070_v40 = vld [vmem:[%s1279_s1 + $0xc0] sm:$0xff]  ;;  %v20_v43 = vld [vmem:[%s1278_s0 + $0x10] sm:$0xff] }
  0x17   :  { %v1062_v39 = vpack.c.bf16 %v65_v38, %v64_v37  ;;  %v18_v41 = vld [vmem:[%s1278_s0] sm:$0xff]  ;;  %v21_v42 = vld [vmem:[%s1278_s0 + $0x18] sm:$0xff]  ;;  %v23_v44 = vld [vmem:[%s1278_s0 + $0x28] sm:$0xff] }
  0x18   :  { %748 = vmatpush1.bf16.msra.mxu0 %v747_v21  ;;  %v22_v45 = vld [vmem:[%s1278_s0 + $0x20] sm:$0xff]  ;;  %v25_v46 = vld [vmem:[%s1278_s0 + $0x38] sm:$0xff]  ;;  %v24_v47 = vld [vmem:[%s1278_s0 + $0x30] sm:$0xff] }
  0x19   :  { %749 = vmatprep.subr.bf16.mxu0 %v916_v3  ;;  %v27_v48 = vld [vmem:[%s1278_s0 + $0x48] sm:$0xff]  ;;  %v26_v49 = vld [vmem:[%s1278_s0 + $0x40] sm:$0xff]  ;;  %v29_v50 = vld [vmem:[%s1278_s0 + $0x58] sm:$0xff] }
  0x1a   :  { %v28_v51 = vld [vmem:[%s1278_s0 + $0x50] sm:$0xff]  ;;  %v31_v52 = vld [vmem:[%s1278_s0 + $0x68] sm:$0xff]  ;;  %v30_v53 = vld [vmem:[%s1278_s0 + $0x60] sm:$0xff] }
  0x1b   :  { %778 = vmatpush1.bf16.xpose.msk.msra.mxu1 %vm995_vm2, %v738_v10  ;;  %v33_v54 = vld [vmem:[%s1278_s0 + $0x78] sm:$0xff]  ;;  %v32_v55 = vld [vmem:[%s1278_s0 + $0x70] sm:$0xff]  ;;  %v35_v56 = vld [vmem:[%s1278_s0 + $0x88] sm:$0xff] }
  0x1c   :  { %751 = vmatpush1.bf16.msra.mxu0 %v750_v24  ;;  %779 = vmatprep.subr.bf16.mxu1 %v916_v3  ;;  %v34_v57 = vld [vmem:[%s1278_s0 + $0x80] sm:$0xff]  ;;  %v37_v58 = vld [vmem:[%s1278_s0 + $0x98] sm:$0xff]  ;;  %v36_v59 = vld [vmem:[%s1278_s0 + $0x90] sm:$0xff] }
  0x1d   :  { %752 = vmatprep.subr.bf16.mxu0 %v916_v3  ;;  %v39_v60 = vld [vmem:[%s1278_s0 + $0xa8] sm:$0xff]  ;;  %v38_v61 = vld [vmem:[%s1278_s0 + $0xa0] sm:$0xff]  ;;  %v41_v62 = vld [vmem:[%s1278_s0 + $0xb8] sm:$0xff] }
  0x1e   :  { %v40_v63 = vld [vmem:[%s1278_s0 + $0xb0] sm:$0xff]  ;;  %v1186_v0 = vld [vmem:[%s1280_s2] ss:$0 sm:$0xff] }
  0x20   :  { %754 = vmatpush1.bf16.msra.mxu0 %v753_v27 }
  0x21   :  { %755 = vmatprep.subr.bf16.mxu0 %v916_v3 }
  0x23   :  { %782 = vmatpush1.bf16.xpose.msk.msra.mxu1 %vm995_vm2, %v741_v14 }
  0x24   :  { %757 = vmatpush1.bf16.msra.mxu0 %v1026_v30  ;;  %783 = vmatprep.subr.bf16.mxu1 %v916_v3 }
  0x25   :  { %758 = vmatprep.subr.bf16.mxu0 %v916_v3 }
  0x28   :  { %760 = vmatpush1.bf16.msra.mxu0 %v1039_v33 }
  0x29   :  { %761 = vmatprep.subr.bf16.mxu0 %v916_v3 }
  0x2b   :  { %786 = vmatpush1.bf16.xpose.msk.msra.mxu1 %vm995_vm2, %v744_v17 }
  0x2c   :  { %763 = vmatpush1.bf16.msra.mxu0 %v1049_v36  ;;  %787 = vmatprep.subr.bf16.mxu1 %v916_v3 }
  0x2d   :  { %764 = vmatprep.subr.bf16.mxu0 %v916_v3 }
  0x30   :  { %766 = vmatpush1.bf16.msra.mxu0 %v1062_v39 }
  0x31   :  { %159 = vmatprep.subr.mxu0 %v917_v6 }
  0x33   :  { %790 = vmatpush1.bf16.xpose.msk.msra.mxu1 %vm995_vm2, %v747_v21 }
  0x34   :  { %160 = vmatpush1.msra.mxu0 %v1070_v40  ;;  %791 = vmatprep.subr.bf16.mxu1 %v916_v3 }
  0x35   :  { %176 = vmatmul.mubr.f32.vlgmr.msra.gmra.mrb[0].mxu0 %v18_v41 }
  0x36   :  { %683 = vmatprep.mubr.msk.f32.mxu0 %vm74_vm0, %v21_v42 }
  0x39   :  { %181 = vmatmul.mubr.f32.gmra.mrb[2].mxu0 %v20_v43 }
  0x3a   :  { %684 = vmatprep.mubr.msk.f32.mxu0 %vm74_vm0, %v23_v44 }
  0x3b   :  { %794 = vmatpush1.bf16.xpose.msk.msra.mxu1 %vm995_vm2, %v750_v24 }
  0x3c   :  { %795 = vmatprep.subr.bf16.mxu1 %v916_v3 }
  0x3d   :  { %186 = vmatmul.mubr.f32.gmra.mrb[4].mxu0 %v22_v45 }
  0x3e   :  { %685 = vmatprep.mubr.msk.f32.mxu0 %vm74_vm0, %v25_v46 }
  0x41   :  { %191 = vmatmul.mubr.f32.gmra.mrb[6].mxu0 %v24_v47 }
  0x42   :  { %686 = vmatprep.mubr.msk.f32.mxu0 %vm74_vm0, %v27_v48 }
  0x43   :  { %798 = vmatpush1.bf16.xpose.msk.msra.mxu1 %vm995_vm2, %v753_v27 }
  0x44   :  { %799 = vmatprep.subr.bf16.mxu1 %v916_v3 }
  0x45   :  { %196 = vmatmul.mubr.f32.gmra.mrb[8].mxu0 %v26_v49 }
  0x46   :  { %687 = vmatprep.mubr.msk.f32.mxu0 %vm74_vm0, %v29_v50 }
  0x49   :  { %201 = vmatmul.mubr.f32.gmra.mrb[10].mxu0 %v28_v51 }
  0x4a   :  { %688 = vmatprep.mubr.msk.f32.mxu0 %vm74_vm0, %v31_v52 }
  0x4b   :  { %802 = vmatpush1.bf16.xpose.msk.msra.mxu1 %vm995_vm2, %v1026_v30 }
  0x4c   :  { %803 = vmatprep.subr.bf16.mxu1 %v916_v3 }
  0x4d   :  { %206 = vmatmul.mubr.f32.gmra.mrb[12].mxu0 %v30_v53 }
  0x4e   :  { %689 = vmatprep.mubr.msk.f32.mxu0 %vm74_vm0, %v33_v54 }
  0x51   :  { %211 = vmatmul.mubr.f32.gmra.mrb[14].mxu0 %v32_v55 }
  0x52   :  { %690 = vmatprep.mubr.msk.f32.mxu0 %vm74_vm0, %v35_v56 }
  0x53   :  { %806 = vmatpush1.bf16.xpose.msk.msra.mxu1 %vm995_vm2, %v1039_v33 }
  0x54   :  { %807 = vmatprep.subr.bf16.mxu1 %v916_v3 }
  0x55   :  { %216 = vmatmul.mubr.f32.gmra.mrb[16].mxu0 %v34_v57 }
  0x56   :  { %691 = vmatprep.mubr.msk.f32.mxu0 %vm74_vm0, %v37_v58 }
  0x59   :  { %221 = vmatmul.mubr.f32.gmra.mrb[18].mxu0 %v36_v59 }
  0x5a   :  { %692 = vmatprep.mubr.msk.f32.mxu0 %vm74_vm0, %v39_v60 }
  0x5b   :  { %810 = vmatpush1.bf16.xpose.msk.msra.mxu1 %vm995_vm2, %v1049_v36 }
  0x5c   :  { %811 = vmatprep.subr.bf16.mxu1 %v916_v3 }
  0x5d   :  { %226 = vmatmul.mubr.f32.gmra.mrb[20].mxu0 %v38_v61 }
  0x5e   :  { %693 = vmatprep.mubr.msk.f32.mxu0 %vm74_vm0, %v41_v62 }
  0x61   :  { %231 = vmatmul.mubr.f32.gmra.mrb[22].mxu0 %v40_v63 }
  0x63   :  { %814 = vmatpush1.bf16.xpose.msk.msra.mxu1 %vm995_vm2, %v1062_v39 }
  0x64   :  { %456 = vmatprep.subr.mxu1 %v917_v6 }
  0x6b   :  { %718 = vmatpush1.xpose.msk.msra.mxu1 %vm296_vm1, %v1070_v40 }
 0x108   :  { %v177_v1 = vpop.f32.mrb[0].mxu0 }
 0x109   :  { %v178_v2 = vadd.f32 %v1186_v0, %v177_v1  ;;  %v179_v4 = vpop.f32.mrb[1].mxu0 }
 0x10b   :  { %v236_v5 = vmul.f32 0.5, %v178_v2 }
 0x10c   :  { %v182_v3 = vpop.f32.mrb[2].mxu0 }
 0x10d   :  { %820 = vtanh.f32 %v236_v5  ;;  %v183_v7 = vadd.f32 %v1186_v0, %v182_v3  ;;  %v184_v8 = vpop.f32.mrb[3].mxu0 }
 0x10f   :  { %v237_v9 = vmul.f32 0.5, %v183_v7 }
 0x110   :  { %v187_v10 = vpop.f32.mrb[4].mxu0 }
 0x111   :  { %822 = vtanh.f32 %v237_v9  ;;  %v188_v11 = vadd.f32 %v1186_v0, %v187_v10  ;;  %v189_v12 = vpop.f32.mrb[5].mxu0 }
 0x113   :  { %v238_v13 = vmul.f32 0.5, %v188_v11 }
 0x114   :  { %v192_v14 = vpop.f32.mrb[6].mxu0 }
 0x115   :  { %824 = vtanh.f32 %v238_v13  ;;  %v193_v15 = vadd.f32 %v1186_v0, %v192_v14  ;;  %v194_v16 = vpop.f32.mrb[7].mxu0 }
 0x117   :  { %v821_v17 = vpop.eup %820  ;;  %v239_v18 = vmul.f32 0.5, %v193_v15 }
 0x118   :  { %v260_v19 = vmul.f32 0.5, %v821_v17  ;;  %v197_v20 = vpop.f32.mrb[8].mxu0 }
 0x119   :  { %826 = vtanh.f32 %v239_v18  ;;  %v198_v21 = vadd.f32 %v1186_v0, %v197_v20  ;;  %v199_v22 = vpop.f32.mrb[9].mxu0 }
 0x11a   :  { %v272_v23 = vadd.f32 0.5, %v260_v19 }
 0x11b   :  { %v823_v24 = vpop.eup %822  ;;  %v240_v25 = vmul.f32 0.5, %v198_v21 }
 0x11c   :  { %v261_v26 = vmul.f32 0.5, %v823_v24  ;;  %v202_v27 = vpop.f32.mrb[10].mxu0  ;;  %719 = vmatmul.mubr.msk.f32.vlgmr.msra.gmra.mrb[0].mxu1 %vm296_vm1, %v272_v23  ;;  %v286_v23 = vlaneseq }
 0x11d   :  { %828 = vtanh.f32 %v240_v25  ;;  %v203_v28 = vadd.f32 %v1186_v0, %v202_v27  ;;  %v204_v29 = vpop.f32.mrb[11].mxu0  ;;  %478 = vmatprep.mubr.f32.mxu1 %v917_v6 }
 0x11e   :  { %v273_v30 = vadd.f32 0.5, %v261_v26  ;;  %v287_v24 = vshrl.u32 %v286_v23, 7  ;;  %v284_v26 = vld [vmem:[%s1281_s3] sm:$0x3]  ;;  %s918_s3 = smov [#allocation2]  }
 0x11f   :  { %v825_v31 = vpop.eup %824  ;;  %v241_v32 = vmul.f32 0.5, %v203_v28  ;;  %s670_s9 = sshll.u32 %s918_s3, 4  ;;  %s671_s9 = int_to_ptr.vmem [resolvable:$true] %s670_s9 }
 0x120   :  { %v262_v33 = vmul.f32 0.5, %v825_v31  ;;  %v207_v34 = vpop.f32.mrb[12].mxu0  ;;  %720 = vmatmul.mubr.msk.f32.gmra.mrb[2].mxu1 %vm296_vm1, %v273_v30  ;;  %v288_v25 = vsub.s32 0, %v287_v24  ;;  %v292_v27 = vsub.s32 1, %v287_v24  ;;  %s892_s10 = scalar_lea.vmem %s671_s9, 3072  ;;  %p897_p1 = scmp.lt.s32.totalorder %s671_s9, %s671_s9 }
 0x121   :  { %830 = vtanh.f32 %v241_v32  ;;  %v208_v35 = vadd.f32 %v1186_v0, %v207_v34  ;;  %v209_v36 = vpop.f32.mrb[13].mxu0  ;;  %484 = vmatprep.mubr.f32.mxu1 %v917_v6  ;;  %p893_p0 = scmp.ne.s32.totalorder %s671_s9, %s892_s10  ;;  %p898_p2 = scmp.lt.s32.totalorder %s892_s10, %s892_s10 }
 0x122   :  { %v274_v37 = vadd.f32 0.5, %v262_v33  ;;  %v1226_v28 = vrot.slane %v284_v26, %v288_v25  ;;  %v1228_v29 = vrot.slane %v284_v26, %v292_v27 }
 0x123   :  { %v827_v38 = vpop.eup %826  ;;  %v242_v39 = vmul.f32 0.5, %v208_v35  ;;  %p899_p3 = por %p898_p2, %p897_p1 }
 0x124   :  { %v263_v40 = vmul.f32 0.5, %v827_v38  ;;  %v212_v41 = vpop.f32.mrb[14].mxu0  ;;  %721 = vmatmul.mubr.msk.f32.gmra.mrb[4].mxu1 %vm296_vm1, %v274_v37 }
 0x125   :  { %832 = vtanh.f32 %v242_v39  ;;  %v213_v42 = vadd.f32 %v1186_v0, %v212_v41  ;;  %v214_v43 = vpop.f32.mrb[15].mxu0  ;;  %490 = vmatprep.mubr.f32.mxu1 %v917_v6  ;;  %p900_p4 = pnand %p899_p3, %p893_p0 }
 0x126   :  { %v275_v44 = vadd.f32 0.5, %v263_v40 }
 0x127   :  { %v829_v45 = vpop.eup %828  ;;  %v243_v46 = vmul.f32 0.5, %v213_v42 }
 0x128   :  { %v264_v47 = vmul.f32 0.5, %v829_v45  ;;  %v217_v48 = vpop.f32.mrb[16].mxu0  ;;  %722 = vmatmul.mubr.msk.f32.gmra.mrb[6].mxu1 %vm296_vm1, %v275_v44 }
 0x129   :  { %834 = vtanh.f32 %v243_v46  ;;  %v218_v49 = vadd.f32 %v1186_v0, %v217_v48  ;;  %v219_v50 = vpop.f32.mrb[17].mxu0  ;;  %496 = vmatprep.mubr.f32.mxu1 %v917_v6 }
 0x12a   :  { %v276_v51 = vadd.f32 0.5, %v264_v47 }
 0x12b   :  { %v831_v52 = vpop.eup %830  ;;  %v244_v53 = vmul.f32 0.5, %v218_v49 }
 0x12c   :  { %v265_v54 = vmul.f32 0.5, %v831_v52  ;;  %v222_v55 = vpop.f32.mrb[18].mxu0  ;;  %723 = vmatmul.mubr.msk.f32.gmra.mrb[8].mxu1 %vm296_vm1, %v276_v51 }
 0x12d   :  { %836 = vtanh.f32 %v244_v53  ;;  %v223_v56 = vadd.f32 %v1186_v0, %v222_v55  ;;  %v224_v57 = vpop.f32.mrb[19].mxu0  ;;  %502 = vmatprep.mubr.f32.mxu1 %v917_v6 }
 0x12e   :  { %v277_v58 = vadd.f32 0.5, %v265_v54 }
 0x12f   :  { %v833_v59 = vpop.eup %832  ;;  %v245_v60 = vmul.f32 0.5, %v223_v56 }
 0x130   :  { %v266_v61 = vmul.f32 0.5, %v833_v59  ;;  %v227_v62 = vpop.f32.mrb[20].mxu0  ;;  %724 = vmatmul.mubr.msk.f32.gmra.mrb[10].mxu1 %vm296_vm1, %v277_v58 }
 0x131   :  { %838 = vtanh.f32 %v245_v60  ;;  %v228_v63 = vadd.f32 %v1186_v0, %v227_v62  ;;  %v229_v1 = vpop.f32.mrb[21].mxu0  ;;  %508 = vmatprep.mubr.f32.mxu1 %v917_v6 }
 0x132   :  { %v278_v2 = vadd.f32 0.5, %v266_v61 }
 0x133   :  { %v835_v4 = vpop.eup %834  ;;  %v246_v5 = vmul.f32 0.5, %v228_v63 }
 0x134   :  { %v267_v3 = vmul.f32 0.5, %v835_v4  ;;  %v232_v7 = vpop.f32.mrb[22].mxu0  ;;  %725 = vmatmul.mubr.msk.f32.gmra.mrb[12].mxu1 %vm296_vm1, %v278_v2 }
 0x135   :  { %840 = vtanh.f32 %v246_v5  ;;  %v233_v8 = vadd.f32 %v1186_v0, %v232_v7  ;;  %v234_v9 = vpop.f32.mrb[23].mxu0  ;;  %514 = vmatprep.mubr.f32.mxu1 %v917_v6 }
 0x136   :  { %v279_v10 = vadd.f32 0.5, %v267_v3 }
 0x137   :  { %v837_v11 = vpop.eup %836  ;;  %v247_v12 = vmul.f32 0.5, %v233_v8 }
 0x138   :  { %v268_v13 = vmul.f32 0.5, %v837_v11  ;;  %726 = vmatmul.mubr.msk.f32.gmra.mrb[14].mxu1 %vm296_vm1, %v279_v10 }
 0x139   :  { %842 = vtanh.f32 %v247_v12  ;;  %520 = vmatprep.mubr.f32.mxu1 %v917_v6 }
 0x13a   :  { %v280_v14 = vadd.f32 0.5, %v268_v13 }
 0x13b   :  { %v839_v15 = vpop.eup %838 }
 0x13c   :  { %v269_v16 = vmul.f32 0.5, %v839_v15  ;;  %727 = vmatmul.mubr.msk.f32.gmra.mrb[16].mxu1 %vm296_vm1, %v280_v14 }
 0x13d   :  { %526 = vmatprep.mubr.f32.mxu1 %v917_v6 }
 0x13e   :  { %v281_v0 = vadd.f32 0.5, %v269_v16 }
 0x13f   :  { %v841_v17 = vpop.eup %840 }
 0x140   :  { %v270_v18 = vmul.f32 0.5, %v841_v17  ;;  %728 = vmatmul.mubr.msk.f32.gmra.mrb[18].mxu1 %vm296_vm1, %v281_v0 }
 0x141   :  { %532 = vmatprep.mubr.f32.mxu1 %v917_v6 }
 0x142   :  { %v282_v19 = vadd.f32 0.5, %v270_v18 }
 0x143   :  { %v843_v20 = vpop.eup %842 }
 0x144   :  { %v271_v21 = vmul.f32 0.5, %v843_v20  ;;  %729 = vmatmul.mubr.msk.f32.gmra.mrb[20].mxu1 %vm296_vm1, %v282_v19 }
 0x145   :  { %538 = vmatprep.mubr.f32.mxu1 %v917_v6 }
 0x146   :  { %v283_v22 = vadd.f32 0.5, %v271_v21 }
 0x148   :  { %730 = vmatmul.mubr.msk.f32.gmra.mrb[22].mxu1 %vm296_vm1, %v283_v22 }
 0x1ef   :  { %v474_v30 = vpop.f32.mrb[0].mxu1 }
 0x1f0   :  { %v475_v31 = vadd.f32 %v474_v30, %v1226_v28  ;;  %v476_v32 = vpop.f32.mrb[1].mxu1 }
 0x1f1   :  { %v477_v6 = vadd.f32 %v476_v32, %v1228_v29 }
 0x1f2   :  { %v545_v33 = vmul.f32 0.5, %v475_v31 }
 0x1f3   :  { %v546_v34 = vmul.f32 0.5, %v477_v6  ;;  %v480_v35 = vpop.f32.mrb[2].mxu1 }
 0x1f4   :  { %844 = vtanh.f32 %v545_v33  ;;  %v481_v36 = vadd.f32 %v480_v35, %v1226_v28  ;;  %v482_v37 = vpop.f32.mrb[3].mxu1 }
 0x1f5   :  { %846 = vtanh.f32 %v546_v34  ;;  %v483_v38 = vadd.f32 %v482_v37, %v1228_v29 }
 0x1f6   :  { %v547_v39 = vmul.f32 0.5, %v481_v36 }
 0x1f7   :  { %v548_v40 = vmul.f32 0.5, %v483_v38  ;;  %v486_v41 = vpop.f32.mrb[4].mxu1 }
 0x1f8   :  { %848 = vtanh.f32 %v547_v39  ;;  %v487_v42 = vadd.f32 %v486_v41, %v1226_v28  ;;  %v488_v43 = vpop.f32.mrb[5].mxu1 }
 0x1f9   :  { %850 = vtanh.f32 %v548_v40  ;;  %v489_v44 = vadd.f32 %v488_v43, %v1228_v29 }
 0x1fa   :  { %v549_v45 = vmul.f32 0.5, %v487_v42 }
 0x1fb   :  { %v550_v46 = vmul.f32 0.5, %v489_v44  ;;  %v492_v47 = vpop.f32.mrb[6].mxu1 }
 0x1fc   :  { %852 = vtanh.f32 %v549_v45  ;;  %v493_v48 = vadd.f32 %v492_v47, %v1226_v28  ;;  %v494_v49 = vpop.f32.mrb[7].mxu1 }
 0x1fd   :  { %854 = vtanh.f32 %v550_v46  ;;  %v495_v50 = vadd.f32 %v494_v49, %v1228_v29 }
 0x1fe   :  { %v845_v51 = vpop.eup %844  ;;  %v551_v52 = vmul.f32 0.5, %v493_v48 }
 0x1ff   :  { %v847_v53 = vpop.eup %846  ;;  %v593_v54 = vmul.f32 0.5, %v845_v51  ;;  %v552_v55 = vmul.f32 0.5, %v495_v50  ;;  %v498_v56 = vpop.f32.mrb[8].mxu1 }
 0x200   :  { %v594_v57 = vmul.f32 0.5, %v847_v53  ;;  %856 = vtanh.f32 %v551_v52  ;;  %v499_v58 = vadd.f32 %v498_v56, %v1226_v28  ;;  %v500_v59 = vpop.f32.mrb[9].mxu1 }
 0x201   :  { %v617_v60 = vadd.f32 0.5, %v593_v54  ;;  %858 = vtanh.f32 %v552_v55  ;;  %v501_v61 = vadd.f32 %v500_v59, %v1228_v29 }
 0x202   :  { %v849_v62 = vpop.eup %848  ;;  %v618_v63 = vadd.f32 0.5, %v594_v57  ;;  %v553_v1 = vmul.f32 0.5, %v499_v58 }
 0x203   :  { %v851_v2 = vpop.eup %850  ;;  %641 = vst [vmem:[#allocation2] sm:$0xff] %v617_v60  ;;  %v595_v4 = vmul.f32 0.5, %v849_v62  ;;  %v554_v5 = vmul.f32 0.5, %v501_v61  ;;  %v504_v3 = vpop.f32.mrb[10].mxu1 }
 0x204   :  { %642 = vst.msk [vmem:[#allocation2 + $0x8] sm:$0xff] %vm74_vm0, %v618_v63  ;;  %v596_v7 = vmul.f32 0.5, %v851_v2  ;;  %860 = vtanh.f32 %v553_v1  ;;  %v505_v8 = vadd.f32 %v504_v3, %v1226_v28  ;;  %v506_v9 = vpop.f32.mrb[11].mxu1 }
 0x205   :  { %v619_v10 = vadd.f32 0.5, %v595_v4  ;;  %862 = vtanh.f32 %v554_v5  ;;  %v507_v11 = vadd.f32 %v506_v9, %v1228_v29 }
 0x206   :  { %v853_v12 = vpop.eup %852  ;;  %v620_v13 = vadd.f32 0.5, %v596_v7  ;;  %v555_v14 = vmul.f32 0.5, %v505_v8 }
 0x207   :  { %v855_v15 = vpop.eup %854  ;;  %643 = vst [vmem:[#allocation2 + $0x10] sm:$0xff] %v619_v10  ;;  %v597_v16 = vmul.f32 0.5, %v853_v12  ;;  %v556_v0 = vmul.f32 0.5, %v507_v11  ;;  %v510_v17 = vpop.f32.mrb[12].mxu1 }
 0x208   :  { %644 = vst.msk [vmem:[#allocation2 + $0x18] sm:$0xff] %vm74_vm0, %v620_v13  ;;  %v598_v18 = vmul.f32 0.5, %v855_v15  ;;  %864 = vtanh.f32 %v555_v14  ;;  %v511_v19 = vadd.f32 %v510_v17, %v1226_v28  ;;  %v512_v20 = vpop.f32.mrb[13].mxu1 }
 0x209   :  { %v621_v21 = vadd.f32 0.5, %v597_v16  ;;  %866 = vtanh.f32 %v556_v0  ;;  %v513_v22 = vadd.f32 %v512_v20, %v1228_v29 }
 0x20a   :  { %v857_v23 = vpop.eup %856  ;;  %v622_v24 = vadd.f32 0.5, %v598_v18  ;;  %v557_v25 = vmul.f32 0.5, %v511_v19 }
 0x20b   :  { %v859_v26 = vpop.eup %858  ;;  %645 = vst [vmem:[#allocation2 + $0x20] sm:$0xff] %v621_v21  ;;  %v599_v27 = vmul.f32 0.5, %v857_v23  ;;  %v558_v30 = vmul.f32 0.5, %v513_v22  ;;  %v516_v31 = vpop.f32.mrb[14].mxu1 }
 0x20c   :  { %646 = vst.msk [vmem:[#allocation2 + $0x28] sm:$0xff] %vm74_vm0, %v622_v24  ;;  %v600_v32 = vmul.f32 0.5, %v859_v26  ;;  %868 = vtanh.f32 %v557_v25  ;;  %v517_v6 = vadd.f32 %v516_v31, %v1226_v28  ;;  %v518_v33 = vpop.f32.mrb[15].mxu1 }
 0x20d   :  { %v623_v34 = vadd.f32 0.5, %v599_v27  ;;  %870 = vtanh.f32 %v558_v30  ;;  %v519_v35 = vadd.f32 %v518_v33, %v1228_v29 }
 0x20e   :  { %v861_v36 = vpop.eup %860  ;;  %v624_v37 = vadd.f32 0.5, %v600_v32  ;;  %v559_v38 = vmul.f32 0.5, %v517_v6 }
 0x20f   :  { %v863_v39 = vpop.eup %862  ;;  %647 = vst [vmem:[#allocation2 + $0x30] sm:$0xff] %v623_v34  ;;  %v601_v40 = vmul.f32 0.5, %v861_v36  ;;  %v560_v41 = vmul.f32 0.5, %v519_v35  ;;  %v522_v42 = vpop.f32.mrb[16].mxu1 }
 0x210   :  { %648 = vst.msk [vmem:[#allocation2 + $0x38] sm:$0xff] %vm74_vm0, %v624_v37  ;;  %v602_v43 = vmul.f32 0.5, %v863_v39  ;;  %872 = vtanh.f32 %v559_v38  ;;  %v523_v44 = vadd.f32 %v522_v42, %v1226_v28  ;;  %v524_v45 = vpop.f32.mrb[17].mxu1 }
 0x211   :  { %v625_v46 = vadd.f32 0.5, %v601_v40  ;;  %874 = vtanh.f32 %v560_v41  ;;  %v525_v47 = vadd.f32 %v524_v45, %v1228_v29 }
 0x212   :  { %v865_v48 = vpop.eup %864  ;;  %v626_v49 = vadd.f32 0.5, %v602_v43  ;;  %v561_v50 = vmul.f32 0.5, %v523_v44 }
 0x213   :  { %v867_v51 = vpop.eup %866  ;;  %649 = vst [vmem:[#allocation2 + $0x40] sm:$0xff] %v625_v46  ;;  %v603_v52 = vmul.f32 0.5, %v865_v48  ;;  %v562_v53 = vmul.f32 0.5, %v525_v47  ;;  %v528_v54 = vpop.f32.mrb[18].mxu1 }
 0x214   :  { %650 = vst.msk [vmem:[#allocation2 + $0x48] sm:$0xff] %vm74_vm0, %v626_v49  ;;  %v604_v55 = vmul.f32 0.5, %v867_v51  ;;  %876 = vtanh.f32 %v561_v50  ;;  %v529_v56 = vadd.f32 %v528_v54, %v1226_v28  ;;  %v530_v57 = vpop.f32.mrb[19].mxu1 }
 0x215   :  { %v627_v58 = vadd.f32 0.5, %v603_v52  ;;  %878 = vtanh.f32 %v562_v53  ;;  %v531_v59 = vadd.f32 %v530_v57, %v1228_v29 }
 0x216   :  { %v869_v60 = vpop.eup %868  ;;  %v628_v61 = vadd.f32 0.5, %v604_v55  ;;  %v563_v62 = vmul.f32 0.5, %v529_v56 }
 0x217   :  { %v871_v63 = vpop.eup %870  ;;  %651 = vst [vmem:[#allocation2 + $0x50] sm:$0xff] %v627_v58  ;;  %v605_v1 = vmul.f32 0.5, %v869_v60  ;;  %v564_v2 = vmul.f32 0.5, %v531_v59  ;;  %v534_v4 = vpop.f32.mrb[20].mxu1 }
 0x218   :  { %652 = vst.msk [vmem:[#allocation2 + $0x58] sm:$0xff] %vm74_vm0, %v628_v61  ;;  %v606_v5 = vmul.f32 0.5, %v871_v63  ;;  %880 = vtanh.f32 %v563_v62  ;;  %v535_v3 = vadd.f32 %v534_v4, %v1226_v28  ;;  %v536_v7 = vpop.f32.mrb[21].mxu1 }
 0x219   :  { %v629_v8 = vadd.f32 0.5, %v605_v1  ;;  %882 = vtanh.f32 %v564_v2  ;;  %v537_v9 = vadd.f32 %v536_v7, %v1228_v29 }
 0x21a   :  { %v873_v10 = vpop.eup %872  ;;  %v630_v11 = vadd.f32 0.5, %v606_v5  ;;  %v565_v12 = vmul.f32 0.5, %v535_v3 }
 0x21b   :  { %v875_v13 = vpop.eup %874  ;;  %653 = vst [vmem:[#allocation2 + $0x60] sm:$0xff] %v629_v8  ;;  %v607_v14 = vmul.f32 0.5, %v873_v10  ;;  %v566_v15 = vmul.f32 0.5, %v537_v9  ;;  %v540_v16 = vpop.f32.mrb[22].mxu1 }
 0x21c   :  { %654 = vst.msk [vmem:[#allocation2 + $0x68] sm:$0xff] %vm74_vm0, %v630_v11  ;;  %v608_v0 = vmul.f32 0.5, %v875_v13  ;;  %884 = vtanh.f32 %v565_v12  ;;  %v541_v17 = vadd.f32 %v540_v16, %v1226_v28  ;;  %v542_v18 = vpop.f32.mrb[23].mxu1 }
 0x21d   :  { %v631_v19 = vadd.f32 0.5, %v607_v14  ;;  %886 = vtanh.f32 %v566_v15  ;;  %v543_v20 = vadd.f32 %v542_v18, %v1228_v29 }
 0x21e   :  { %v877_v21 = vpop.eup %876  ;;  %v632_v22 = vadd.f32 0.5, %v608_v0  ;;  %v567_v23 = vmul.f32 0.5, %v541_v17 }
 0x21f   :  { %v879_v24 = vpop.eup %878  ;;  %655 = vst [vmem:[#allocation2 + $0x70] sm:$0xff] %v631_v19  ;;  %v609_v25 = vmul.f32 0.5, %v877_v21  ;;  %v568_v26 = vmul.f32 0.5, %v543_v20 }
 0x220   :  { %656 = vst.msk [vmem:[#allocation2 + $0x78] sm:$0xff] %vm74_vm0, %v632_v22  ;;  %v610_v27 = vmul.f32 0.5, %v879_v24  ;;  %888 = vtanh.f32 %v567_v23 }
 0x221   :  { %v633_v30 = vadd.f32 0.5, %v609_v25  ;;  %890 = vtanh.f32 %v568_v26 }
 0x222   :  { %v881_v31 = vpop.eup %880  ;;  %v634_v28 = vadd.f32 0.5, %v610_v27 }
 0x223   :  { %v883_v32 = vpop.eup %882  ;;  %657 = vst [vmem:[#allocation2 + $0x80] sm:$0xff] %v633_v30  ;;  %v611_v6 = vmul.f32 0.5, %v881_v31 }
 0x224   :  { %658 = vst.msk [vmem:[#allocation2 + $0x88] sm:$0xff] %vm74_vm0, %v634_v28  ;;  %v612_v29 = vmul.f32 0.5, %v883_v32 }
 0x225   :  { %v635_v33 = vadd.f32 0.5, %v611_v6 }
 0x226   :  { %v885_v34 = vpop.eup %884  ;;  %v636_v35 = vadd.f32 0.5, %v612_v29 }
 0x227   :  { %v887_v36 = vpop.eup %886  ;;  %659 = vst [vmem:[#allocation2 + $0x90] sm:$0xff] %v635_v33  ;;  %v613_v37 = vmul.f32 0.5, %v885_v34 }
 0x228   :  { %660 = vst.msk [vmem:[#allocation2 + $0x98] sm:$0xff] %vm74_vm0, %v636_v35  ;;  %v614_v38 = vmul.f32 0.5, %v887_v36 }
 0x229   :  { %v637_v39 = vadd.f32 0.5, %v613_v37 }
 0x22a   :  { %v889_v40 = vpop.eup %888  ;;  %v638_v41 = vadd.f32 0.5, %v614_v38 }
 0x22b   :  { %v891_v42 = vpop.eup %890  ;;  %661 = vst [vmem:[#allocation2 + $0xa0] sm:$0xff] %v637_v39  ;;  %v615_v43 = vmul.f32 0.5, %v889_v40 }
 0x22c   :  { %662 = vst.msk [vmem:[#allocation2 + $0xa8] sm:$0xff] %vm74_vm0, %v638_v41  ;;  %v616_v44 = vmul.f32 0.5, %v891_v42 }
 0x22d   :  { %v639_v45 = vadd.f32 0.5, %v615_v43 }
 0x22e   :  { %v640_v46 = vadd.f32 0.5, %v616_v44 }
 0x22f   :  { %663 = vst [vmem:[#allocation2 + $0xb0] sm:$0xff] %v639_v45 }
 0x230   :  { %664 = vst.msk [vmem:[#allocation2 + $0xb8] sm:$0xff] %vm74_vm0, %v640_v46 }
 0x231   :  { %903 = shalt.err (!%p900_p4)
}
 0x232   :  { %s904_s13 = scalar_lea.hbm %s1282_s4, 3072 }
 0x233   :  { %p905_p5 = scmp.ne.s32.totalorder %s1282_s4, %s904_s13  ;;  %p908_p6 = scmp.lt.u32.totalorder %s904_s13, %s1282_s4 }
 0x235   :  { %p910_p7 = pnand %p908_p6, %p905_p5 }
 0x237   :  { %913 = shalt.err (!%p910_p7)
}
 0x238   :  { %s919_s18 = smov 256   ;;  %s920_s1 = smov 16  }
 0x239   :  { %676 = dma.vmem_to_hbm [thread:$0]  %s671_s9, 3072, %s1282_s4, [#allocation3], %s919_s18, %s919_s18, %s920_s1  }
 0x23a   :  { %914 = dma.done.wait [#allocation3], 3072  }
 0x23b   :  { %915 = vsyncadd [#allocation3], 4294964224 }
 0x23c   :  { %680 = vsyncpa [#allocation3], 1 }

</bundles_post_ra>
